<compile_context>
chip_gen: v7x
topology: tpu7x:2x2x1
jax: 0.10.0
libtpu: 0.0.40
codegen_flags: <defaults>
</compile_context>

<pallas_src>
import jax
import jax.numpy as jnp
from jax.experimental import pallas as pl
from jax.experimental.pallas import tpu as pltpu


def _change_rate_kernel(yp_ref, yt_ref, out_ref, acc_ref, carry_ref):
    j = pl.program_id(1)
    n_j = pl.num_programs(1)

    # Error signal: every term of the loss depends only on e = y_pred - y_true.
    e = yp_ref[...].astype(jnp.float32) - yt_ref[...].astype(jnp.float32)
    tb, tt = e.shape

    # One XLU rotate gives the "previous element" for every lane.
    # pltpu.roll matches jnp.roll: shifted[:, 0] = e[:, tt-1],
    # shifted[:, k] = e[:, k-1] for k >= 1 (wrap lands at lane 0).
    shifted = pltpu.roll(e, shift=1, axis=1)

    @pl.when(j == 0)
    def _():
        acc_ref[...] = jnp.zeros_like(acc_ref)
        # Makes the boundary term of the first sequence tile exactly zero.
        carry_ref[...] = e[:, 0:1]

    # Fused wrap-mask + cross-tile boundary: at lane 0 the previous element is
    # the last column of the previous sequence tile (carried in VMEM scratch);
    # elsewhere it is the rotated tile.
    lane = jax.lax.broadcasted_iota(jnp.int32, (tb, tt), 1)
    prev = jnp.where(lane == 0, carry_ref[...], shifted)
    de = e - prev
    d2 = de * de

    # Fold the lane axis into 128-wide chunks with static aligned slices (pure
    # VALU adds, no XLU) so the accumulator RMW is only (tb, 128) per step.
    folded = d2[:, 0:128]
    for c in range(1, tt // 128):
        folded = folded + d2[:, c * 128:(c + 1) * 128]
    acc_ref[...] += folded

    # Carry this tile's last column (already at lane 0 of the rotated tile).
    carry_ref[...] = shifted[:, 0:1]

    @pl.when(j == n_j - 1)
    def _():
        total = jnp.sum(acc_ref[...])
        # Lane-dense full-block store; wrapper reads element [i, 0, 0].
        out_ref[...] = jnp.full(out_ref.shape, total, dtype=out_ref.dtype)


def change_rate_loss(y_pred, y_true, *, block_b=512, block_t=2048):
    """Pallas TPU implementation of ChangeRateLoss.forward(y_pred, y_true)."""
    assert y_pred.shape == y_true.shape, "y_pred / y_true shape mismatch"
    assert y_pred.ndim == 2, "expected (batch, seq) inputs"
    B, T = y_pred.shape
    if T < 2:
        raise ValueError("ChangeRateLoss requires seq length >= 2")

    itemsize = jnp.dtype(y_pred.dtype).itemsize

    def _round_up(x, m):
        return (x + m - 1) // m * m

    # Keep HBM bytes per grid step constant across dtypes (bf16 doubles block_t).
    block_t = block_t * max(1, 4 // itemsize)
    block_b = max(8, _round_up(block_b, 8))
    block_t = max(128, _round_up(block_t, 128))

    # Lane-dense, vreg-aligned tiles; clamp to the (padded) array extents.
    TB = min(block_b, _round_up(B, 8))
    TT = min(block_t, _round_up(T, 128))

    # Keep double-buffered inputs + scratch within a budget that is safe on
    # v7x (64 MiB VMEM per TensorCore) as well as v5e/v6e.
    VMEM_BUDGET = 40 * 1024 * 1024

    def _vmem_needed(tb, tt):
        return (2 * 2 * tb * tt * itemsize      # 2 inputs x 2 pipeline buffers
                + 2 * tb * 128 * 4              # acc + (lane-padded) carry scratch
                + 2 * 8 * 128 * 4)              # output blocks

    while _vmem_needed(TB, TT) > VMEM_BUDGET and TT > 128:
        TT = max(128, (TT // 2) // 128 * 128)
    while _vmem_needed(TB, TT) > VMEM_BUDGET and TB > 8:
        TB = max(8, (TB // 2) // 8 * 8)

    # Megacore (v7x: 2 TensorCores): ensure >= 2 blocks on the "parallel" batch
    # axis when that still leaves >= 1 MiB of input DMA per grid step.
    if _round_up(B, TB) // TB < 2:
        tb_half = _round_up((B + 1) // 2, 8)
        if 8 <= tb_half < TB and 2 * tb_half * TT * itemsize >= (1 << 20):
            TB = tb_half

    Bp = _round_up(B, TB)
    Tp = _round_up(T, TT)

    yp, yt = y_pred, y_true
    if Tp != T:
        # Edge padding => padded change-rate terms are exactly zero.
        yp = jnp.pad(yp, ((0, 0), (0, Tp - T)), mode="edge")
        yt = jnp.pad(yt, ((0, 0), (0, Tp - T)), mode="edge")
    if Bp != B:
        # Zero rows contribute zero to the sum.
        yp = jnp.pad(yp, ((0, Bp - B), (0, 0)))
        yt = jnp.pad(yt, ((0, Bp - B), (0, 0)))

    ib, jt = Bp // TB, Tp // TT

    grid_spec = pltpu.PrefetchScalarGridSpec(
        num_scalar_prefetch=0,
        grid=(ib, jt),                       # reduction (seq) axis last
        in_specs=[
            pl.BlockSpec((TB, TT), lambda i, j: (i, j)),
            pl.BlockSpec((TB, TT), lambda i, j: (i, j)),
        ],
        out_specs=pl.BlockSpec((1, 8, 128), lambda i, j: (i, 0, 0)),
        scratch_shapes=[
            pltpu.VMEM((TB, 128), jnp.float32),  # folded partial-sum accumulator
            pltpu.VMEM((TB, 1), jnp.float32),    # carried last column (seq halo)
        ],
    )

    cost = pl.CostEstimate(
        flops=8 * Bp * Tp,
        transcendentals=0,
        bytes_accessed=2 * Bp * Tp * itemsize + ib * 8 * 128 * 4,
    )

    vmem_limit = min(max(32 * 1024 * 1024, _vmem_needed(TB, TT) + (8 << 20)),
                     48 * 1024 * 1024)

    partials = pl.pallas_call(
        _change_rate_kernel,
        out_shape=jax.ShapeDtypeStruct((ib, 8, 128), jnp.float32),
        grid_spec=grid_spec,
        compiler_params=pltpu.CompilerParams(
            dimension_semantics=("parallel", "arbitrary"),
            vmem_limit_bytes=vmem_limit),
        cost_estimate=cost,
    )(yp, yt)

    # Tiny final reduction + normalization in the wrapper (original B, T).
    return jnp.sum(partials[:, 0, 0]) / (B * (T - 1))


def _reference(y_pred, y_true):
    yp = y_pred.astype(jnp.float32)
    yt = y_true.astype(jnp.float32)
    dp = yp[:, 1:] - yp[:, :-1]
    dt = yt[:, 1:] - yt[:, :-1]
    return jnp.mean((dp - dt) ** 2)


if __name__ == "__main__":
    key = jax.random.PRNGKey(0)
    k1, k2, k3, k4 = jax.random.split(key, 4)

    # Case 1: small unaligned (batch, seq) with default tiles -> exercises
    # edge/zero padding and the single-tile path.
    yp1 = jax.random.normal(k1, (4, 16), dtype=jnp.float32)
    yt1 = jax.random.normal(k2, (4, 16), dtype=jnp.float32)
    out1 = jax.block_until_ready(change_rate_loss(yp1, yt1))
    ref1 = _reference(yp1, yt1)
    assert jnp.allclose(out1, ref1, atol=1e-5, rtol=1e-5), (out1, ref1)

    # Case 2: multi-tile grid (2 batch tiles x 3 seq tiles) -> exercises the
    # batch-parallel axis, the carry across seq tiles, and the fused lane-0
    # boundary select.
    yp2 = jax.random.normal(k3, (16, 384), dtype=jnp.float32)
    yt2 = jax.random.normal(k4, (16, 384), dtype=jnp.float32)
    out2 = jax.block_until_ready(
        change_rate_loss(yp2, yt2, block_b=8, block_t=128))
    ref2 = _reference(yp2, yt2)
    assert jnp.allclose(out2, ref2, atol=1e-4, rtol=1e-4), (out2, ref2)

    # Case 3: bf16 ingestion (kernel casts to f32; block_t auto-doubled).
    yp3 = yp2.astype(jnp.bfloat16)
    yt3 = yt2.astype(jnp.bfloat16)
    out3 = jax.block_until_ready(
        change_rate_loss(yp3, yt3, block_b=8, block_t=128))
    ref3 = _reference(yp3, yt3)
    assert jnp.allclose(out3, ref3, atol=1e-4, rtol=1e-4), (out3, ref3)

    print("KERNEL_OK")
</pallas_src>

<mosaic_0001>
module attributes {stable_mosaic.version = 11 : i64} {
  func.func @_change_rate_kernel(%arg0: i32, %arg1: i32, %arg2: memref<8x128xf32, #tpu.memory_space<vmem>>, %arg3: memref<8x128xf32, #tpu.memory_space<vmem>>, %arg4: memref<1x8x128xf32, #tpu.memory_space<vmem>>, %arg5: memref<8x128xf32, #tpu.memory_space<vmem>>, %arg6: memref<8x1xf32, #tpu.memory_space<vmem>>) attributes {dimension_semantics = [#tpu.dimension_semantics<parallel>, #tpu.dimension_semantics<arbitrary>], iteration_bounds = array<i64: 1, 1>, scalar_prefetch = 0 : i64, scratch_operands = 2 : i64, tpu.core_type = #tpu.core_type<tc>, window_params = [{transform_indices = @transform_0, window_bounds = array<i64: 8, 128>}, {transform_indices = @transform_1, window_bounds = array<i64: 8, 128>}, {transform_indices = @transform_2, window_bounds = array<i64: 1, 8, 128>}]} {
    %c0 = arith.constant 0 : index
    %c0_0 = arith.constant 0 : index
    %0 = vector.load %arg2[%c0, %c0_0] : memref<8x128xf32, #tpu.memory_space<vmem>>, vector<8x128xf32>
    %c0_1 = arith.constant 0 : index
    %c0_2 = arith.constant 0 : index
    %1 = vector.load %arg3[%c0_1, %c0_2] : memref<8x128xf32, #tpu.memory_space<vmem>>, vector<8x128xf32>
    %2 = arith.subf %0, %1 : vector<8x128xf32>
    %c1_i32 = arith.constant 1 : i32
    %3 = tpu.dynamic_rotate %2 by %c1_i32 dim 1 : vector<8x128xf32>, i32 -> vector<8x128xf32>
    %c0_i32 = arith.constant 0 : i32
    %4 = arith.cmpi eq, %arg1, %c0_i32 : i32
    %5 = arith.extui %4 : i1 to i32
    %c0_i32_3 = arith.constant 0 : i32
    %6 = arith.cmpi ne, %5, %c0_i32_3 : i32
    scf.if %6 {
      %cst = arith.constant 0.000000e+00 : f32
      %24 = vector.broadcast %cst : f32 to vector<8x128xf32>
      %c0_15 = arith.constant 0 : index
      %c0_16 = arith.constant 0 : index
      %25 = vector.load %arg5[%c0_15, %c0_16] : memref<8x128xf32, #tpu.memory_space<vmem>>, vector<8x128xf32>
      tpu.vector_store %arg5[%c0_15, %c0_16], %24 {strides = array<i32>} : memref<8x128xf32, #tpu.memory_space<vmem>>, vector<8x128xf32>,
      %26 = vector.extract_strided_slice %2 {offsets = [0, 0], sizes = [8, 1], strides = [1, 1]} : vector<8x128xf32> to vector<8x1xf32>
      %c0_17 = arith.constant 0 : index
      %c0_18 = arith.constant 0 : index
      %27 = vector.load %arg6[%c0_17, %c0_18] : memref<8x1xf32, #tpu.memory_space<vmem>>, vector<8x1xf32>
      tpu.vector_store %arg6[%c0_17, %c0_18], %26 {strides = array<i32>} : memref<8x1xf32, #tpu.memory_space<vmem>>, vector<8x1xf32>,
    } else {
    }
    %7 = tpu.iota {dimensions = array<i32: 1>} : vector<8x128xi32>
    %c0_i32_4 = arith.constant 0 : i32
    %8 = vector.broadcast %c0_i32_4 : i32 to vector<8x128xi32>
    %9 = arith.cmpi eq, %7, %8 : vector<8x128xi32>
    %c0_5 = arith.constant 0 : index
    %c0_6 = arith.constant 0 : index
    %10 = vector.load %arg6[%c0_5, %c0_6] : memref<8x1xf32, #tpu.memory_space<vmem>>, vector<8x1xf32>
    %11 = vector.shape_cast %10 : vector<8x1xf32> to vector<8x1xf32>
    %12 = vector.broadcast %11 : vector<8x1xf32> to vector<8x128xf32>
    %13 = arith.select %9, %12, %3 : vector<8x128xi1>, vector<8x128xf32>
    %14 = arith.subf %2, %13 : vector<8x128xf32>
    %15 = arith.mulf %14, %14 : vector<8x128xf32>
    %c0_7 = arith.constant 0 : index
    %c0_8 = arith.constant 0 : index
    %16 = vector.load %arg5[%c0_7, %c0_8] : memref<8x128xf32, #tpu.memory_space<vmem>>, vector<8x128xf32>
    %17 = arith.addf %16, %15 : vector<8x128xf32>
    %c0_9 = arith.constant 0 : index
    %c0_10 = arith.constant 0 : index
    %18 = vector.load %arg5[%c0_9, %c0_10] : memref<8x128xf32, #tpu.memory_space<vmem>>, vector<8x128xf32>
    tpu.vector_store %arg5[%c0_9, %c0_10], %17 {strides = array<i32>} : memref<8x128xf32, #tpu.memory_space<vmem>>, vector<8x128xf32>,
    %19 = vector.extract_strided_slice %3 {offsets = [0, 0], sizes = [8, 1], strides = [1, 1]} : vector<8x128xf32> to vector<8x1xf32>
    %c0_11 = arith.constant 0 : index
    %c0_12 = arith.constant 0 : index
    %20 = vector.load %arg6[%c0_11, %c0_12] : memref<8x1xf32, #tpu.memory_space<vmem>>, vector<8x1xf32>
    tpu.vector_store %arg6[%c0_11, %c0_12], %19 {strides = array<i32>} : memref<8x1xf32, #tpu.memory_space<vmem>>, vector<8x1xf32>,
    %c0_i32_13 = arith.constant 0 : i32
    %21 = arith.cmpi eq, %arg1, %c0_i32_13 : i32
    %22 = arith.extui %21 : i1 to i32
    %c0_i32_14 = arith.constant 0 : i32
    %23 = arith.cmpi ne, %22, %c0_i32_14 : i32
    scf.if %23 {
      %c0_15 = arith.constant 0 : index
      %c0_16 = arith.constant 0 : index
      %24 = vector.load %arg5[%c0_15, %c0_16] : memref<8x128xf32, #tpu.memory_space<vmem>>, vector<8x128xf32>
      %25 = vector.shape_cast %24 : vector<8x128xf32> to vector<1x8x128xf32>
      %cst = arith.constant dense<0.000000e+00> : vector<1xf32>
      %26 = vector.multi_reduction <add>, %25, %cst [1, 2] : vector<1x8x128xf32> to vector<1xf32>
      %27 = vector.shape_cast %26 : vector<1xf32> to vector<1x1x1xf32>
      %28 = vector.extract %27[0, 0, 0] : f32 from vector<1x1x1xf32>
      %29 = vector.broadcast %28 : f32 to vector<1x8x128xf32>
      %c0_17 = arith.constant 0 : index
      %c0_18 = arith.constant 0 : index
      %c0_19 = arith.constant 0 : index
      %30 = vector.load %arg4[%c0_17, %c0_18, %c0_19] : memref<1x8x128xf32, #tpu.memory_space<vmem>>, vector<1x8x128xf32>
      tpu.vector_store %arg4[%c0_17, %c0_18, %c0_19], %29 {strides = array<i32>} : memref<1x8x128xf32, #tpu.memory_space<vmem>>, vector<1x8x128xf32>,
    } else {
    }
    return
  }
  func.func @transform_0(%arg0: i32, %arg1: i32) -> (i32, i32) {
    %c0_i32 = arith.constant 0 : i32
    return %arg0, %arg1 : i32, i32
  }
  func.func @transform_1(%arg0: i32, %arg1: i32) -> (i32, i32) {
    %c0_i32 = arith.constant 0 : i32
    return %arg0, %arg1 : i32, i32
  }
  func.func @transform_2(%arg0: i32, %arg1: i32) -> (i32, i32, i32) {
    %c0_i32 = arith.constant 0 : i32
    %c0_i32_0 = arith.constant 0 : i32
    %c0_i32_1 = arith.constant 0 : i32
    return %arg0, %c0_i32, %c0_i32_0 : i32, i32, i32
  }
}

</mosaic_0001>

<bundles_post_ra>
// kernel: tpu_custom_call.1
= control target key start
LH: loop header
LB: loop body
LE: loop exit
PB: predicated region body
PF: predicated region fallthrough
CT: control target
= control target key end

     0   :  { %7 = vsyncpa [#allocation5], 0  ;;  %s232_s0 = inlined_call_operand.hbm [shape: f32[8,128], index: 0, kind: input, shape index: {}]   ;;  %s233_s1 = inlined_call_operand.hbm [shape: f32[8,128], index: 1, kind: input, shape index: {}]   ;;  %s234_s2 = inlined_call_operand.hbm [shape: f32[1,8,128], index: 2, kind: output, shape index: {}]  }
   0x1   :  { %8 = vsyncpa [#allocation8], 0 }
   0x2   :  { %9 = vsyncpa [#allocation6], 0  ;;  %s176_s9 = smov [#allocation4]   ;;  %s177_s11 = smov [#allocation7]  }
   0x3   :  { %s16_s10 = sshll.u32 %s176_s9, 4  ;;  %s26_s12 = sshll.u32 %s177_s11, 4  ;;  %s17_s10 = int_to_ptr.vmem [resolvable:$true] %s16_s10  ;;  %s27_s12 = int_to_ptr.vmem [resolvable:$true] %s26_s12 }
   0x4   :  { %s104_s15 = scalar_lea.hbm %s232_s0, 128 }
   0x5   :  { %p105_p0 = scmp.ne.s32.totalorder %s232_s0, %s104_s15  ;;  %p108_p1 = scmp.lt.u32.totalorder %s104_s15, %s232_s0 }
   0x7   :  { %p110_p2 = pnand %p108_p1, %p105_p0 }
   0x9   :  { %113 = shalt.err (!%p110_p2)
}
   0xa   :  { %s114_s20 = scalar_lea.vmem %s17_s10, 128  ;;  %p119_p4 = scmp.lt.s32.totalorder %s17_s10, %s17_s10 }
   0xb   :  { %p115_p3 = scmp.ne.s32.totalorder %s17_s10, %s114_s20  ;;  %p120_p5 = scmp.lt.s32.totalorder %s114_s20, %s114_s20 }
   0xd   :  { %p121_p6 = por %p120_p5, %p119_p4 }
   0xf   :  { %p122_p7 = pnand %p121_p6, %p115_p3 }
  0x11   :  { %125 = shalt.err (!%p122_p7)
}
  0x12   :  { %19 = dma.hbm_to_vmem [thread:$0]  %s232_s0, 128, %s17_s10, [#allocation5]  }
  0x13   :  { %s126_s25 = scalar_lea.hbm %s233_s1, 128 }
  0x14   :  { %p127_p8 = scmp.ne.s32.totalorder %s233_s1, %s126_s25  ;;  %p130_p9 = scmp.lt.u32.totalorder %s126_s25, %s233_s1 }
  0x16   :  { %p132_p10 = pnand %p130_p9, %p127_p8 }
  0x18   :  { %135 = shalt.err (!%p132_p10)
}
  0x19   :  { %s136_s30 = scalar_lea.vmem %s27_s12, 128  ;;  %p141_p12 = scmp.lt.s32.totalorder %s27_s12, %s27_s12 }
  0x1a   :  { %p137_p11 = scmp.ne.s32.totalorder %s27_s12, %s136_s30  ;;  %p142_p13 = scmp.lt.s32.totalorder %s136_s30, %s136_s30 }
  0x1c   :  { %p143_p0 = por %p142_p13, %p141_p12 }
  0x1e   :  { %p144_p1 = pnand %p143_p0, %p137_p11 }
  0x20   :  { %147 = shalt.err (!%p144_p1)
}
  0x21   :  { %29 = dma.hbm_to_vmem [thread:$0]  %s233_s1, 128, %s27_s12, [#allocation8]  }
  0x22   :  { %170 = dma.done.wait [#allocation5], 128  }
  0x23   :  { %171 = vsyncadd [#allocation5], 4294967168 }
  0x24   :  { %172 = dma.done.wait [#allocation8], 128  }
  0x25   :  { %173 = vsyncadd [#allocation8], 4294967168  ;;  %v178_v0 = vmov 0   ;;  %v36_v1 = vld [vmem:[#allocation4] sm:$0xff]  ;;  %v37_v2 = vld [vmem:[#allocation7] sm:$0xff]  ;;  %vm46_vm0 = vcmask 7168   ;;  %v48_v5 = vlaneseq }
  0x26   :  { %103 = vset.pattern.permute.xlu0 %v178_v0  ;;  %v38_v3 = vsub.f32 %v36_v1, %v37_v2  ;;  %s179_s4 = smov 1   ;;  %s180_s1 = smov [#allocation9]  }
  0x27   :  { %v49_v6 = vand.u32 127, %v48_v5  ;;  %s86_s5 = sshll.u32 %s180_s1, 4  ;;  %s87_s5 = int_to_ptr.vmem [resolvable:$true] %s86_s5 }
  0x28   :  { %47 = vst.msk [vmem:[#allocation3] sm:$0xff] %vm46_vm0, %v38_v3  ;;  %s148_s7 = scalar_lea.vmem %s87_s5, 128  ;;  %p153_p3 = scmp.lt.s32.totalorder %s87_s5, %s87_s5 }
  0x29   :  { %vm50_vm1 = vcmp.eq.s32.totalorder %v49_v6, 0  ;;  %p149_p2 = scmp.ne.s32.totalorder %s87_s5, %s148_s7  ;;  %p154_p4 = scmp.lt.s32.totalorder %s148_s7, %s148_s7 }
  0x2b   :  { %p155_p5 = por %p154_p4, %p153_p3 }
  0x2d   :  { %p156_p6 = pnand %p155_p5, %p149_p2 }
  0x2f   :  { %v51_v4 = vld [vmem:[#allocation3] sm:$0xff] }
  0x30   :  { %54 = vperm.xlu0 %103, %v51_v4  }
  0x34   :  { %39 = vrot.lane.b32.xlu0 %v38_v3, %s179_s4 }
  0xaf   :  { %v55_v7 = vpop.permute.xlu0 %54 }
  0xb3   :  { %v40_v8 = vpop.permute.xlu0 %39 }
  0xb4   :  { %64 = vst.msk [vmem:[#allocation3] sm:$0xff] %vm46_vm0, %v40_v8  ;;  %v57_v9 = vsel %vm50_vm1, %v55_v7, %v40_v8 }
  0xb5   :  { %v58_v10 = vsub.f32 %v38_v3, %v57_v9 }
  0xb7   :  { %v59_v11 = vmul.f32 %v58_v10, %v58_v10 }
  0xb9   :  { %69 = vadd.xlane.f32.xlu1 %v59_v11 }
 0x146   :  { %v70_v12 = vpop.xlane.xlu1 %69 }
 0x147   :  { %v71_v13 = vrot.slane %v70_v12, 4 }
 0x149   :  { %v72_v14 = vadd.f32 %v71_v13, %v70_v12 }
 0x14b   :  { %v73_v15 = vrot.slane %v72_v14, 2 }
 0x14d   :  { %v74_v16 = vadd.f32 %v73_v15, %v72_v14 }
 0x14f   :  { %v75_v17 = vrot.slane %v74_v16, 1 }
 0x151   :  { %v76_v18 = vadd.f32 %v75_v17, %v74_v16 }
 0x153   :  { %96 = vpush %v76_v18 }
 0x184   :  { %s97_s6 = spop %96 }
 0x185   :  { %v78_v19 = vstv %s97_s6 }
 0x186   :  { %79 = vst [vmem:[#allocation9] sm:$0xff] %v78_v19 }
 0x187   :  { %159 = shalt.err (!%p156_p6)
}
 0x188   :  { %s160_s10 = scalar_lea.hbm %s234_s2, 128 }
 0x189   :  { %p161_p7 = scmp.ne.s32.totalorder %s234_s2, %s160_s10  ;;  %p164_p8 = scmp.lt.u32.totalorder %s160_s10, %s234_s2 }
 0x18b   :  { %p166_p9 = pnand %p164_p8, %p161_p7 }
 0x18d   :  { %169 = shalt.err (!%p166_p9)
}
 0x18e   :  { %89 = dma.vmem_to_hbm [thread:$0]  %s87_s5, 128, %s234_s2, [#allocation6]  }
 0x18f   :  { %174 = dma.done.wait [#allocation6], 128  }
 0x190   :  { %175 = vsyncadd [#allocation6], 4294967168 }
 0x191   :  { %93 = vsyncpa [#allocation5], 1 }
 0x192   :  { %94 = vsyncpa [#allocation8], 1 }
 0x193   :  { %95 = vsyncpa [#allocation6], 1 }

</bundles_post_ra>
